<compile_context>
chip_gen: v5e
topology: v5e:2x2
jax: 0.10.0
libtpu: 0.0.40
codegen_flags: <defaults>
</compile_context>

<pallas_src>
import functools

import numpy as np
import jax
import jax.numpy as jnp
from jax import lax
from jax.experimental import pallas as pl
from jax.experimental.pallas import tpu as pltpu


def _row_tile(L, max_tile=256):
    """Largest row tile <= max_tile that divides L (multiple of 8 if possible)."""
    if L <= max_tile:
        return L
    for tl in range(max_tile, 0, -1):
        if L % tl == 0 and (tl % 8 == 0):
            return tl
    return L


# ----------------------------------------------------------------------------
# Kernel 1a: fused QKV projection, self-attention (single input, concat weight)
# ----------------------------------------------------------------------------
def _qkv_self_kernel(x_ref, w_ref, o_ref):
    # x_ref: (1, TL, Dm), w_ref: (Dm, Wtot), o_ref: (1, TL, Wtot)
    o_ref[0] = jnp.dot(
        x_ref[0], w_ref[...], preferred_element_type=jnp.float32
    ).astype(o_ref.dtype)


def qkv_projection_self(x, w_qkv, *, out_dtype, max_row_tile=256):
    B, L, Dm = x.shape
    Wtot = w_qkv.shape[1]
    TL = _row_tile(L, max_row_tile)
    return pl.pallas_call(
        _qkv_self_kernel,
        out_shape=jax.ShapeDtypeStruct((B, L, Wtot), out_dtype),
        grid=(B, L // TL),
        in_specs=[
            pl.BlockSpec((1, TL, Dm), lambda b, t: (b, t, 0)),
            pl.BlockSpec((Dm, Wtot), lambda b, t: (0, 0)),
        ],
        out_specs=pl.BlockSpec((1, TL, Wtot), lambda b, t: (b, t, 0)),
        compiler_params=pltpu.CompilerParams(
            dimension_semantics=("parallel", "parallel")
        ),
    )(x, w_qkv)


# ----------------------------------------------------------------------------
# Kernel 1b: fused QKV projection, distinct q/k/v inputs (one fused output)
# ----------------------------------------------------------------------------
def _qkv_cross_kernel(q_ref, k_ref, v_ref, wq_ref, wk_ref, wv_ref, o_ref):
    qp = jnp.dot(q_ref[0], wq_ref[...], preferred_element_type=jnp.float32)
    kp = jnp.dot(k_ref[0], wk_ref[...], preferred_element_type=jnp.float32)
    vp = jnp.dot(v_ref[0], wv_ref[...], preferred_element_type=jnp.float32)
    # single full-width (lane-dense) store
    o_ref[0] = jnp.concatenate([qp, kp, vp], axis=-1).astype(o_ref.dtype)


def qkv_projection_cross(q, k, v, w_qs, w_ks, w_vs, *, out_dtype, max_row_tile=256):
    B, L, Dm = q.shape
    Hdk = w_qs.shape[1]
    Hdv = w_vs.shape[1]
    Wtot = 2 * Hdk + Hdv
    TL = _row_tile(L, max_row_tile)
    return pl.pallas_call(
        _qkv_cross_kernel,
        out_shape=jax.ShapeDtypeStruct((B, L, Wtot), out_dtype),
        grid=(B, L // TL),
        in_specs=[
            pl.BlockSpec((1, TL, Dm), lambda b, t: (b, t, 0)),
            pl.BlockSpec((1, TL, Dm), lambda b, t: (b, t, 0)),
            pl.BlockSpec((1, TL, Dm), lambda b, t: (b, t, 0)),
            pl.BlockSpec((Dm, Hdk), lambda b, t: (0, 0)),
            pl.BlockSpec((Dm, Hdk), lambda b, t: (0, 0)),
            pl.BlockSpec((Dm, Hdv), lambda b, t: (0, 0)),
        ],
        out_specs=pl.BlockSpec((1, TL, Wtot), lambda b, t: (b, t, 0)),
        compiler_params=pltpu.CompilerParams(
            dimension_semantics=("parallel", "parallel")
        ),
    )(q, k, v, w_qs, w_ks, w_vs)


# ----------------------------------------------------------------------------
# Kernel 2: scaled dot-product attention, all heads of one batch per grid step
# ----------------------------------------------------------------------------
def _mha_attn_kernel(qkv_ref, o_ref, *, n_head, d_k, d_v, inv_temperature,
                     compute_dtype):
    # qkv_ref: (1, L, H*(2*d_k + d_v))  layout: [Q heads | K heads | V heads]
    qkv = qkv_ref[0]
    Hdk = n_head * d_k
    outs = []
    for h in range(n_head):          # static unroll over heads
        qh = qkv[:, h * d_k:(h + 1) * d_k]                       # (Lq, d_k)
        kh = qkv[:, Hdk + h * d_k: Hdk + (h + 1) * d_k]          # (Lk, d_k)
        vh = qkv[:, 2 * Hdk + h * d_v: 2 * Hdk + (h + 1) * d_v]  # (Lk, d_v)
        # contract last dims directly: no explicit k.T / XLU transpose
        s = lax.dot_general(
            qh, kh, (((1,), (1,)), ((), ())),
            preferred_element_type=jnp.float32,
        ) * inv_temperature
        m = jnp.max(s, axis=-1, keepdims=True)
        e = jnp.exp(s - m)
        denom = jnp.sum(e, axis=-1, keepdims=True)
        attn = e * pl.reciprocal(denom, approx=True)     # softmax(dim=-1)
        # TODO(synk): attention dropout (training mode) is identity here.
        # log_attn is not materialized: the surrounding module discards it.
        outs.append(
            jnp.dot(attn.astype(compute_dtype), vh,
                    preferred_element_type=jnp.float32)
        )
    # one lane-dense store in the final (L, H*d_v) layout
    o_ref[0] = jnp.concatenate(outs, axis=-1).astype(o_ref.dtype)


def fused_attention(qkv, *, n_head, d_k, d_v, temperature, out_dtype,
                    compute_dtype):
    B, L, Wtot = qkv.shape
    kern = functools.partial(
        _mha_attn_kernel, n_head=n_head, d_k=d_k, d_v=d_v,
        inv_temperature=float(1.0 / temperature), compute_dtype=compute_dtype)
    return pl.pallas_call(
        kern,
        out_shape=jax.ShapeDtypeStruct((B, L, n_head * d_v), out_dtype),
        grid=(B,),
        in_specs=[pl.BlockSpec((1, L, Wtot), lambda b: (b, 0, 0))],
        out_specs=pl.BlockSpec((1, L, n_head * d_v), lambda b: (b, 0, 0)),
        compiler_params=pltpu.CompilerParams(dimension_semantics=("parallel",)),
    )(qkv)


# ----------------------------------------------------------------------------
# Kernel 3: output fc (with bias) + residual add + LayerNorm
# ----------------------------------------------------------------------------
def _fc_ln_kernel(x_ref, w_ref, b_ref, res_ref, g_ref, beta_ref, o_ref, *, eps):
    # x_ref: (1, TL, H*d_v), w_ref: (H*d_v, d_model)
    y = jnp.dot(x_ref[0], w_ref[...], preferred_element_type=jnp.float32)
    y = y + b_ref[...]            # bias, broadcast (1, d_model)
    # TODO(synk): output dropout (training mode) is identity here.
    y = y + res_ref[0]            # residual
    mean = jnp.mean(y, axis=-1, keepdims=True)
    var = jnp.mean((y - mean) ** 2, axis=-1, keepdims=True)   # biased (PyTorch LN)
    yn = (y - mean) * lax.rsqrt(var + eps)
    o_ref[0] = (yn * g_ref[...] + beta_ref[...]).astype(o_ref.dtype)


def fc_residual_layernorm(x, w, b, residual, gamma, beta, *, eps=1e-5,
                          max_row_tile=256):
    B, L, Din = x.shape
    d_model = w.shape[1]
    TL = _row_tile(L, max_row_tile)
    kern = functools.partial(_fc_ln_kernel, eps=float(eps))
    return pl.pallas_call(
        kern,
        out_shape=jax.ShapeDtypeStruct((B, L, d_model), jnp.float32),
        grid=(B, L // TL),
        in_specs=[
            pl.BlockSpec((1, TL, Din), lambda b, t: (b, t, 0)),
            pl.BlockSpec((Din, d_model), lambda b, t: (0, 0)),
            pl.BlockSpec((1, d_model), lambda b, t: (0, 0)),
            pl.BlockSpec((1, TL, d_model), lambda b, t: (b, t, 0)),
            pl.BlockSpec((1, d_model), lambda b, t: (0, 0)),
            pl.BlockSpec((1, d_model), lambda b, t: (0, 0)),
        ],
        out_specs=pl.BlockSpec((1, TL, d_model), lambda b, t: (b, t, 0)),
        compiler_params=pltpu.CompilerParams(
            dimension_semantics=("parallel", "parallel")
        ),
    )(x, w, b, residual, gamma, beta)


# ----------------------------------------------------------------------------
# Full MultiHeadAttention forward
# ----------------------------------------------------------------------------
def multi_head_attention(q, k, v, params, n_head, d_k, d_v, *,
                         matmul_dtype=jnp.float32, eps=1e-5):
    """matmul_dtype=jnp.bfloat16 casts matmul operands (activations / weights)
    to bf16 with f32 accumulation — recommended on v6e/v7x; default f32 keeps
    exact PyTorch-style numerics."""
    sz_b, len_q, d_model = q.shape
    _, len_k, _ = k.shape
    _, len_v, _ = v.shape
    # TODO(synk): len_q != len_k attention not supported by the fused-QKV layout.
    assert len_q == len_k == len_v, "fused path requires equal q/k/v lengths"

    residual = q
    md = matmul_dtype

    if (q is k) and (k is v):
        # Self-attention: single matmul against the concatenated weight.
        w_qkv = jnp.concatenate(
            [params["w_qs"], params["w_ks"], params["w_vs"]], axis=1
        ).astype(md)
        qkv = qkv_projection_self(q.astype(md), w_qkv, out_dtype=md)
    else:
        qkv = qkv_projection_cross(
            q.astype(md), k.astype(md), v.astype(md),
            params["w_qs"].astype(md), params["w_ks"].astype(md),
            params["w_vs"].astype(md), out_dtype=md)

    temperature = float(np.power(d_k, 0.5))
    attn_out = fused_attention(
        qkv, n_head=n_head, d_k=d_k, d_v=d_v, temperature=temperature,
        out_dtype=md, compute_dtype=md)

    out = fc_residual_layernorm(
        attn_out, params["fc_w"].astype(md), params["fc_b"], residual,
        params["ln_g"], params["ln_b"], eps=eps)
    return out


# ----------------------------------------------------------------------------
# Pure-JAX reference (for correctness check)
# ----------------------------------------------------------------------------
def reference_mha(q, k, v, params, n_head, d_k, d_v, eps=1e-5):
    sz_b, len_q, d_model = q.shape
    residual = q
    qp = q @ params["w_qs"]
    kp = k @ params["w_ks"]
    vp = v @ params["w_vs"]
    qh = qp.reshape(sz_b, len_q, n_head, d_k).transpose(0, 2, 1, 3)
    kh = kp.reshape(sz_b, -1, n_head, d_k).transpose(0, 2, 1, 3)
    vh = vp.reshape(sz_b, -1, n_head, d_v).transpose(0, 2, 1, 3)
    s = jnp.einsum("bhqd,bhkd->bhqk", qh, kh) / np.sqrt(d_k)
    attn = jax.nn.softmax(s, axis=-1)
    o = jnp.einsum("bhqk,bhkd->bhqd", attn, vh)
    o = o.transpose(0, 2, 1, 3).reshape(sz_b, len_q, n_head * d_v)
    y = o @ params["fc_w"] + params["fc_b"] + residual
    mean = y.mean(-1, keepdims=True)
    var = ((y - mean) ** 2).mean(-1, keepdims=True)
    return (y - mean) / jnp.sqrt(var + eps) * params["ln_g"] + params["ln_b"]


# ----------------------------------------------------------------------------
if __name__ == "__main__":
    n_head, d_model, d_k, d_v = 2, 32, 16, 16
    sz_b, seq_len = 2, 8

    key = jax.random.PRNGKey(0)
    ks = jax.random.split(key, 8)

    std_qk = np.sqrt(2.0 / (d_model + d_k))
    std_v = np.sqrt(2.0 / (d_model + d_v))
    fc_std = np.sqrt(2.0 / (n_head * d_v + d_model))   # xavier_normal
    fc_bound = 1.0 / np.sqrt(n_head * d_v)             # default Linear bias init

    params = {
        "w_qs": jax.random.normal(ks[0], (d_model, n_head * d_k), jnp.float32) * std_qk,
        "w_ks": jax.random.normal(ks[1], (d_model, n_head * d_k), jnp.float32) * std_qk,
        "w_vs": jax.random.normal(ks[2], (d_model, n_head * d_v), jnp.float32) * std_v,
        "fc_w": jax.random.normal(ks[3], (n_head * d_v, d_model), jnp.float32) * fc_std,
        "fc_b": jax.random.uniform(ks[4], (1, d_model), jnp.float32,
                                   minval=-fc_bound, maxval=fc_bound),
        "ln_g": jnp.ones((1, d_model), jnp.float32),
        "ln_b": jnp.zeros((1, d_model), jnp.float32),
    }

    x = jax.random.normal(ks[5], (sz_b, seq_len, d_model), jnp.float32)

    # --- self-attention path (fused concatenated-weight projection) ---
    out_self = multi_head_attention(x, x, x, params, n_head, d_k, d_v)
    jax.block_until_ready(out_self)
    assert out_self.shape == (sz_b, seq_len, d_model)
    ref_self = reference_mha(x, x, x, params, n_head, d_k, d_v)
    np.testing.assert_allclose(np.asarray(out_self), np.asarray(ref_self),
                               rtol=5e-2, atol=5e-2)

    # --- cross-attention path (distinct q/k/v tensors) ---
    q_in = x
    k_in = jax.random.normal(ks[6], (sz_b, seq_len, d_model), jnp.float32)
    v_in = jax.random.normal(ks[7], (sz_b, seq_len, d_model), jnp.float32)
    out_cross = multi_head_attention(q_in, k_in, v_in, params, n_head, d_k, d_v)
    jax.block_until_ready(out_cross)
    assert out_cross.shape == (sz_b, seq_len, d_model)
    ref_cross = reference_mha(q_in, k_in, v_in, params, n_head, d_k, d_v)
    np.testing.assert_allclose(np.asarray(out_cross), np.asarray(ref_cross),
                               rtol=5e-2, atol=5e-2)

    print("KERNEL_OK")
</pallas_src>

<mosaic_0001>
module attributes {stable_mosaic.version = 11 : i64} {
  func.func @_qkv_self_kernel(%arg0: i32, %arg1: i32, %arg2: memref<1x8x32xf32, #tpu.memory_space<vmem>>, %arg3: memref<32x96xf32, #tpu.memory_space<vmem>>, %arg4: memref<1x8x96xf32, #tpu.memory_space<vmem>>) attributes {dimension_semantics = [#tpu.dimension_semantics<parallel>, #tpu.dimension_semantics<parallel>], iteration_bounds = array<i64: 2, 1>, scalar_prefetch = 0 : i64, scratch_operands = 0 : i64, tpu.core_type = #tpu.core_type<tc>, window_params = [{transform_indices = @transform_0, window_bounds = array<i64: 1, 8, 32>}, {pipeline_mode = #tpu.pipeline_mode<synchronous>, transform_indices = @transform_1, window_bounds = array<i64: 32, 96>}, {transform_indices = @transform_2, window_bounds = array<i64: 1, 8, 96>}]} {
    %c0 = arith.constant 0 : index
    %c0_0 = arith.constant 0 : index
    %c0_1 = arith.constant 0 : index
    %0 = vector.load %arg2[%c0, %c0_0, %c0_1] : memref<1x8x32xf32, #tpu.memory_space<vmem>>, vector<1x8x32xf32>
    %1 = vector.shape_cast %0 : vector<1x8x32xf32> to vector<8x32xf32>
    %c0_2 = arith.constant 0 : index
    %c0_3 = arith.constant 0 : index
    %2 = vector.load %arg3[%c0_2, %c0_3] : memref<32x96xf32, #tpu.memory_space<vmem>>, vector<32x96xf32>
    %cst = arith.constant dense<0.000000e+00> : vector<8x96xf32>
    %3 = tpu.matmul %1, %2, %cst {dimension_numbers = #tpu.dot_dimension_numbers<[1], [0], [0], [1], [0, 0, 1, 1], [], []>} : vector<8x32xf32>, vector<32x96xf32>, vector<8x96xf32> -> vector<8x96xf32>
    %c0_4 = arith.constant 0 : index
    %c0_5 = arith.constant 0 : index
    %c0_6 = arith.constant 0 : index
    %4 = vector.load %arg4[%c0_4, %c0_5, %c0_6] : memref<1x8x96xf32, #tpu.memory_space<vmem>>, vector<1x8x96xf32>
    %5 = vector.shape_cast %4 : vector<1x8x96xf32> to vector<8x96xf32>
    %6 = vector.shape_cast %3 : vector<8x96xf32> to vector<1x8x96xf32>
    tpu.vector_store %arg4[%c0_4, %c0_5, %c0_6], %6 {strides = array<i32>} : memref<1x8x96xf32, #tpu.memory_space<vmem>>, vector<1x8x96xf32>,
    return
  }
  func.func @transform_0(%arg0: i32, %arg1: i32) -> (i32, i32, i32) {
    %c0_i32 = arith.constant 0 : i32
    %c0_i32_0 = arith.constant 0 : i32
    return %arg0, %arg1, %c0_i32 : i32, i32, i32
  }
  func.func @transform_1(%arg0: i32, %arg1: i32) -> (i32, i32) {
    %c0_i32 = arith.constant 0 : i32
    %c0_i32_0 = arith.constant 0 : i32
    %c0_i32_1 = arith.constant 0 : i32
    return %c0_i32, %c0_i32_0 : i32, i32
  }
  func.func @transform_2(%arg0: i32, %arg1: i32) -> (i32, i32, i32) {
    %c0_i32 = arith.constant 0 : i32
    %c0_i32_0 = arith.constant 0 : i32
    return %arg0, %arg1, %c0_i32 : i32, i32, i32
  }
}

</mosaic_0001>

<bundles_post_ra>
// kernel: tpu_custom_call.1
= control target key start
LH: loop header
LB: loop body
LE: loop exit
PB: predicated region body
PF: predicated region fallthrough
CT: control target
= control target key end

     0   :  { %7 = vsyncpa [#allocation3], 0  ;;  %s733_s0 = inlined_call_operand.hbm [shape: f32[2,8,32], index: 0, kind: input, shape index: {}]   ;;  %s734_s1 = inlined_call_operand.hbm [shape: f32[32,96], index: 1, kind: input, shape index: {}]   ;;  %s735_s2 = inlined_call_operand.hbm [shape: f32[2,8,96], index: 2, kind: output, shape index: {}]  }
   0x1   :  { %9 = vsyncpa [#allocation3 + $0x1], 0 }
   0x2   :  { %10 = vsyncpa [#allocation6], 0 }
   0x3   :  { %11 = vsyncpa [#allocation4], 0 }
   0x4   :  { %13 = vsyncpa [#allocation4 + $0x1], 0  ;;  %s590_s9 = smov 0   ;;  %s592_s10 = smov 0  }
   0x5   :  { %s594_s11 = smov 0   ;;  %s596_s12 = smov 0  }
   0x6   :  { %s598_s13 = smov 0   ;;  %s600_s14 = smov 0  }
   0x7 LB: > { %s333_s15 = sadd.s32 4294967295, %s570_s14   ;;  %p335_p0 = scmp.ge.s32.totalorder %s570_s14, 1  ;;  %s570_s14 = sphi %s600_s14, %s19_s14   ;;  %s566_s13 = sphi %s598_s13, %s746_s13   ;;  %s562_s12 = sphi %s596_s12, %s745_s12   ;;  %s558_s11 = sphi %s594_s11, %s744_s11   ;;  %s554_s10 = sphi %s592_s10, %s743_s10   ;;  %s550_s9 = sphi %s590_s9, %s742_s9  }
   0x8   : > { %p622_p1 = scmp.eq.s32.totalorder %s333_s15, 0  ;;  %p113_p2 = scmp.lt.s32.totalorder %s570_s14, 3 }
   0x9   : > { %s124_s19 = sshll.u32 %s734_s1, 4  ;;  %s572_s21 = smov [#allocation5]   ;;  %s125_s19 = int_to_ptr.hbm [resolvable:$true] %s124_s19 }
   0xa   : > { %p630_p3 = pnand %p335_p0, %p113_p2  ;;  %s126_s22 = sshll.u32 %s572_s21, 4  ;;  %s127_s22 = int_to_ptr.vmem [resolvable:$true] %s126_s22 }
   0xb   : > { %p337_p6 = scmp.ge.s32.totalorder %s570_s14, 2  ;;  %s573_s23 = smov 128  }
   0xc   : > { %p357_p4 = pneg %p630_p3  ;;  %s574_s24 = smov 8  }
   0xd   : > { %s334_s25 = sadd.s32 4294967294, %s570_s14   ;;  %s31_s26 = sadd.s32 1, %s566_s13 }
   0xe   : > { %p358_p5 = pnand %p357_p4, %p622_p1  ;;  %s40_s27 = sadd.s32 1, %s558_s11 }
   0xf   : > { %p33_p7 = scmp.ge.s32.totalorder %s31_s26, 2  ;;  %p47_p8 = scmp.ne.s32.totalorder %s558_s11, %s554_s10 }
  0x10   : > { %360 = dma.hbm_to_vmem [thread:$0]  (!%p358_p5), %s125_s19, 512, %s127_s22, [#allocation6], %s573_s23, %s573_s23, %s574_s24  }
  0x11   : > { %p48_p9 = scmp.eq.s32.totalorder %s570_s14, 0  ;;  %p53_p10 = scmp.ne.s32.totalorder %s554_s10, %s550_s9 }
  0x12   : > { %s748_s26 = smov (%p33_p7, %s31_s26), 0  ;;  %p100_p13 = scmp.eq.s32.totalorder %s333_s15, 1 }
  0x13   : > { %p649_p11 = por %p48_p9, %p47_p8  ;;  %p655_p12 = por %p622_p1, %p53_p10 }
  0x14   : > { %s35_s30 = ssub.s32 %s566_s13, %s748_s26  ;;  %p106_p2 = scmp.eq.s32.totalorder %s334_s25, 1 }
  0x15   : > { %p38_p0 = scmp.eq.s32.totalorder %s35_s30, 0  ;;  %p661_p4 = por %p100_p13, %p47_p8 }
  0x16   : > { %p370_p5 = scmp.lt.s32.totalorder %s570_s14, 2  ;;  %p669_p7 = por %p106_p2, %p53_p10 }
  0x17   : > { %s667_s4 = scalar_select %p38_p0, %s558_s11, %s40_s27  }
  0x18   : > { %s140_s6 = sand.u32 1, %s558_s11   ;;  %s339_s8 = sshll.u32 %s566_s13, 3 }
  0x19   : > { %s338_s7 = sshll.u32 %s140_s6, 3  ;;  %s149_s15 = scalar_lea.hbm %s733_s0, %s339_s8 }
  0x1a   : > { %s144_s19 = scalar_lea.vmem [#allocation2], %s338_s7  ;;  %s151_s22 = sshll.u32 %s149_s15, 4  ;;  %s152_s22 = int_to_ptr.hbm [resolvable:$true] %s151_s22 }
  0x1b   : > { %s153_s21 = sshll.u32 %s144_s19, 4  ;;  %p362_p8 = pnand %p370_p5, %p649_p11  ;;  %s154_s21 = int_to_ptr.vmem [resolvable:$true] %s153_s21 }
  0x1c   : > { %s141_s23 = scalar_lea.sflag [#allocation3], %s140_s6  ;;  %162 = sbr.rel (%p630_p3) target bundleno = 173 (0xad), region = 28 }
  0x1d   : > { %364 = dma.hbm_to_vmem [thread:$0]  (!%p362_p8), %s152_s22, 128, %s154_s21, %s141_s23  }
  0x1e   : > { %s683_s24 = sand.u32 (!%p630_p3), 1, %s554_s10  }
  0x1f   : > { %s341_s25 = sshll.u32 (!%p630_p3), %s683_s24, 3  ;;  %s165_s27 = scalar_lea.sflag (!%p630_p3), [#allocation3], %s683_s24 }
  0x20   : > { %s168_s30 = scalar_lea.vmem (!%p630_p3), [#allocation2], %s341_s25 }
  0x21   : > { %537 = dma.done.wait (%p655_p12), %s165_s27, 128  }
  0x22   : > { %539 = vsyncadd (%p655_p12), %s165_s27, 4294967168 }
  0x23   : > { %541 = dma.done.wait (%p622_p1), [#allocation6], 512  }
  0x24   : > { %543 = vsyncadd (%p622_p1), [#allocation6], 4294966784  ;;  %v199_v0 = vld [vmem:[#allocation5 + $0x18] sm:$0xff]  ;;  %v198_v1 = vld [vmem:[#allocation5 + $0x10] sm:$0xff]  ;;  %vm200_vm0 = vcmask 261120   ;;  %s346_s20 = sshll.u32 %s562_s12, 3 }
  0x25   : > { %216 = vmatpush.msra.mxu0 %v199_v0  ;;  %v197_v2 = vld [vmem:[#allocation5 + $0x8] sm:$0xff]  ;;  %v196_v3 = vld [vmem:[#allocation5] sm:$0xff]  ;;  %v195_v4 = vld [vmem:[%s168_s30] sm:$0xff]  ;;  %s238_s16 = scalar_lea.hbm %s735_s2, %s346_s20  ;;  %s194_s6 = scalar_lea.vmem [#allocation7], %s341_s25  ;;  %vm224_vm1 = vcmask 785408  }
  0x26   : > { %s240_s7 = sshll.u32 %s194_s6, 4  ;;  %s242_s8 = sshll.u32 %s238_s16, 4  ;;  %s241_s7 = int_to_ptr.vmem [resolvable:$true] %s240_s7  ;;  %s243_s8 = int_to_ptr.hbm [resolvable:$true] %s242_s8 }
  0x27   : > { %217 = vmatpush.msra.mxu0 %v198_v1  ;;  %s227_s17 = scalar_lea.sflag [#allocation4], %s683_s24  ;;  %s498_s18 = sshra.s32 %s243_s8, 4  ;;  %s499_s18 = int_to_ptr.hbm [resolvable:$true] %s498_s18 }
  0x28   : > { %s500_s15 = scalar_lea.hbm %s499_s18, 8  ;;  %s504_s21 = scalar_lea.hbm %s735_s2, 16 }
  0x29   : > { %218 = vmatpush.msra.mxu0 %v197_v2  ;;  %p501_p1 = scmp.ne.s32.totalorder %s499_s18, %s500_s15  ;;  %p505_p10 = scmp.lt.s32.totalorder %s499_s18, %s735_s2 }
  0x2a   : > { %p506_p11 = scmp.lt.s32.totalorder %s504_s21, %s500_s15 }
  0x2b   : > { %219 = vmatpush.msra.mxu0 %v196_v3  ;;  %p502_p3 = pnand %p501_p1, %p661_p4 }
  0x2c   : > { %344 = vmatmul.msk.f32.vlgmr.msra.gmra.mxu0 %vm200_vm0, %v195_v4  ;;  %p507_p12 = por %p506_p11, %p505_p10 }
  0x2d   : > { %p503_p9 = pneg %p502_p3 }
  0x2f   : > { %p508_p13 = pnand %p507_p12, %p503_p9 }
  0xa9   : > { %v221_v5 = vpop.f32.mrf.mxu0 }
  0xaa   : > { %225 = vst.msk [vmem:[%s194_s6] sm:$0xff] %vm224_vm1, %v221_v5 }
  0xab   : > { %511 = shalt.err (!%p508_p13)
}
  0xac   : > { %355 = dma.vmem_to_hbm [thread:$0]  (%p661_p4), %s241_s7, 128, %s243_s8, %s227_s17  }
  0xad PF: > { %s254_s24 = sand.u32 1, %s550_s9   ;;  %p366_p0 = pnand %p337_p6, %p669_p7 }
  0xae   : > { %s255_s25 = scalar_lea.sflag [#allocation4], %s254_s24 }
  0xaf   : > { %p367_p2 = pneg %p366_p0 }
  0xb1   : > { %545 = dma.done.wait (%p367_p2), %s255_s25, 128  }
  0xb2   : > { %547 = vsyncadd (%p367_p2), %s255_s25, 4294967168  ;;  %s19_s14 = sadd.s32 1, %s570_s14   ;;  %s742_s9 = smov %s554_s10 }
  0xb3   : > { %p16_p5 = scmp.ge.s32.totalorder %s19_s14, 4   ;;  %s743_s10 = smov %s558_s11 }
  0xb4   : > { %s744_s11 = smov %s667_s4  ;;  %s745_s12 = smov %s566_s13 }
  0xb5   : > { %s746_s13 = smov %s748_s26  ;;  %18 = sbr.rel (!%p16_p5) target bundleno = 7 (0x7), region = 77 }
  0xba   :  { %261 = vsyncpa [#allocation3], 1 }
  0xbb   :  { %263 = vsyncpa [#allocation3 + $0x1], 1 }
  0xbc   :  { %264 = vsyncpa [#allocation6], 1 }
  0xbd   :  { %265 = vsyncpa [#allocation4], 1 }
  0xbe   :  { %267 = vsyncpa [#allocation4 + $0x1], 1 }

</bundles_post_ra>
